<compile_context>
chip_gen: v6e
topology: v6e:2x2x1
jax: 0.10.0
libtpu: 0.0.40
codegen_flags: <defaults>
</compile_context>

<pallas_src>
import jax
import jax.numpy as jnp
from jax import lax
from jax.experimental import pallas as pl
from jax.experimental.pallas import tpu as pltpu


# Conservative budgets that work on v5e/v6e (128 MiB VMEM) and v7x (64 MiB).
_VMEM_LIMIT_BYTES = 48 * 1024 * 1024   # scoped-VMEM limit requested per call
_VMEM_BUDGET_BYTES = 32 * 1024 * 1024  # what we size our own buffers against


def _round_up(n, m):
    return (n + m - 1) // m * m


def _pad2(a, rows, cols):
    return jnp.pad(a, ((0, rows - a.shape[0]), (0, cols - a.shape[1])))


# ----------------------------------------------------------------------------
# Pallas kernels
# ----------------------------------------------------------------------------
def _linear_kernel(x_ref, wt_ref, b_ref, o_ref):
    """o = x @ W_t + b  (weights already transposed by the wrapper)."""
    o_ref[...] = (
        jnp.dot(x_ref[...], wt_ref[...], preferred_element_type=jnp.float32)
        + b_ref[...]
    )


def _rnn_recurrence_kernel(xp_ref, whht_ref, out_ref, h_ref):
    """tanh recurrence over one chunk of timesteps (time-major layout).

    xp_ref   : (S_CHUNK, B_pad, H_pad)  precomputed x @ W_ih^T + (b_ih + b_hh)
    whht_ref : (H_pad, H_pad)           pre-transposed W_hh^T (resident)
    out_ref  : (S_CHUNK, B_pad, H_pad)  hidden state per timestep
    h_ref    : (B_pad, H_pad)           VMEM scratch: cross-chunk hidden carry
    """
    @pl.when(pl.program_id(0) == 0)
    def _():
        h_ref[...] = jnp.zeros_like(h_ref)        # h_0 = zeros (init_hidden)

    whh_t = whht_ref[...]                         # hoisted out of the loop
    s_chunk = xp_ref.shape[0]
    b_pad, h_pad = h_ref.shape

    # TODO(synk): hold W_hh^T in the MXU staging registers once per chunk
    # (pltpu.matmul_push_rhs / matmul_acc_lhs / matmul_pop) instead of
    # re-issuing the full RHS via jnp.dot every timestep.
    def step(t, h):
        h_new = jnp.tanh(
            xp_ref[t]
            + jnp.dot(h, whh_t, preferred_element_type=jnp.float32))
        out_ref[t] = h_new                        # contiguous (B_pad, H_pad) slab
        return h_new

    # Scale the unroll with the hidden-state footprint so unrolled iterations
    # do not spill the 64-vreg register file.
    vregs_per_h = max(1, (b_pad * h_pad) // 1024)
    unroll = int(max(1, min(s_chunk, 8, 32 // vregs_per_h)))

    # h carried in vregs across the chunk; the VMEM scratch is only read once
    # (initial carry) and written once (cross-chunk carry).
    h_final = lax.fori_loop(0, s_chunk, step, h_ref[...], unroll=unroll)
    h_ref[...] = h_final


# ----------------------------------------------------------------------------
# Optional single-buffering of constant-index operands (probe once at import;
# silently fall back to default double-buffering if unsupported).
# ----------------------------------------------------------------------------
def _copy_kernel(x_ref, o_ref):
    o_ref[...] = x_ref[...]


def _probe_single_buffer_support():
    try:
        spec = pl.BlockSpec((8, 128), lambda i: (0, 0),
                            pipeline_mode=pl.Buffered(buffer_count=1))
        fn = pl.pallas_call(
            _copy_kernel,
            out_shape=jax.ShapeDtypeStruct((8, 128), jnp.float32),
            grid=(2,),
            in_specs=[spec],
            out_specs=pl.BlockSpec((8, 128), lambda i: (0, 0)),
        )
        jax.block_until_ready(fn(jnp.zeros((8, 128), jnp.float32)))
        return True
    except Exception:
        return False


_SINGLE_BUFFER_OK = _probe_single_buffer_support()


def _maybe_single_buffered(block_shape, index_map):
    """BlockSpec for an operand whose block index never changes."""
    if _SINGLE_BUFFER_OK:
        return pl.BlockSpec(block_shape, index_map,
                            pipeline_mode=pl.Buffered(buffer_count=1))
    return pl.BlockSpec(block_shape, index_map)


# ----------------------------------------------------------------------------
# Wrappers
# ----------------------------------------------------------------------------
def linear(x, w_t, b_row):
    """Tiled o = x @ w_t + b_row.   x:(N,K), w_t:(K,O), b_row:(1,O) -> (N,O).

    K and O must already be multiples of 128 (callers pad).
    """
    N, K = x.shape
    K2, O = w_t.shape
    assert K == K2 and K % 128 == 0 and O % 128 == 0

    TN = 512 if O % 512 == 0 else (256 if O % 256 == 0 else 128)

    # --- Activation-resident path: x stays in VMEM for the whole call, the
    # grid runs over output columns only, so each weight byte streams from
    # HBM exactly once (weight-stream-once for the vocab projection).
    N8 = _round_up(N, 8)
    x_bufs = 1 if _SINGLE_BUFFER_OK else 2
    resident_bytes = (x_bufs * N8 * K + 2 * K * TN + 2 * N8 * TN + 2 * TN) * 4
    if resident_bytes <= _VMEM_BUDGET_BYTES:
        x_p = _pad2(x, N8, K) if N8 != N else x
        out = pl.pallas_call(
            _linear_kernel,
            out_shape=jax.ShapeDtypeStruct((N8, O), jnp.float32),
            grid_spec=pltpu.PrefetchScalarGridSpec(
                num_scalar_prefetch=0,
                grid=(O // TN,),
                in_specs=[
                    _maybe_single_buffered((N8, K), lambda j: (0, 0)),
                    pl.BlockSpec((K, TN), lambda j: (0, j)),
                    pl.BlockSpec((1, TN), lambda j: (0, j)),
                ],
                out_specs=pl.BlockSpec((N8, TN), lambda j: (0, j)),
            ),
            compiler_params=pltpu.CompilerParams(
                dimension_semantics=("parallel",),
                vmem_limit_bytes=_VMEM_LIMIT_BYTES),
        )(x_p, w_t, b_row)
        return out[:N] if N8 != N else out

    # --- Tiled fallback for large activations (MXU-row-sized tiles).
    TM = 256 if N >= 256 else 128
    while (2 * (TM * K + K * TN + TM * TN) * 4 > _VMEM_BUDGET_BYTES
           and (TM > 128 or TN > 128)):
        if TN > 128:
            TN //= 2
        else:
            TM //= 2
    # TODO(synk): add a K grid axis with an f32 VMEM accumulator when a single
    # (TM,K)+(K,TN) double-buffered pair still exceeds the v7x VMEM budget.
    N_pad = _round_up(N, TM)
    x_p = _pad2(x, N_pad, K) if N_pad != N else x
    out = pl.pallas_call(
        _linear_kernel,
        out_shape=jax.ShapeDtypeStruct((N_pad, O), jnp.float32),
        grid_spec=pltpu.PrefetchScalarGridSpec(
            num_scalar_prefetch=0,
            grid=(N_pad // TM, O // TN),
            in_specs=[
                pl.BlockSpec((TM, K), lambda i, j: (i, 0)),
                pl.BlockSpec((K, TN), lambda i, j: (0, j)),
                pl.BlockSpec((1, TN), lambda i, j: (0, j)),
            ],
            out_specs=pl.BlockSpec((TM, TN), lambda i, j: (i, j)),
        ),
        compiler_params=pltpu.CompilerParams(
            dimension_semantics=("parallel", "parallel"),
            vmem_limit_bytes=_VMEM_LIMIT_BYTES),
    )(x_p, w_t, b_row)
    return out[:N] if N_pad != N else out


def rnn_recurrence(xp_tm, whh_t):
    """Run the tanh recurrence over the whole sequence.

    xp_tm : (S, B_pad, H_pad) time-major precomputed input projection.
    whh_t : (H_pad, H_pad)    pre-transposed hidden->hidden weight.
    Returns (S, B_pad, H_pad) hidden states.
    """
    S, B_pad, H_pad = xp_tm.shape

    # VMEM-aware chunk sizing: (in + out) chunks double-buffered + resident
    # weight (+ h scratch) must fit the budget.
    bytes_per_step = 4 * B_pad * H_pad * 4                 # 2 bufs x (in + out)
    w_bufs = 1 if _SINGLE_BUFFER_OK else 2
    fixed = (w_bufs * H_pad * H_pad + B_pad * H_pad) * 4
    avail = max(_VMEM_BUDGET_BYTES - fixed, bytes_per_step)
    max_chunk = int(min(S, max(1, avail // bytes_per_step), 256))

    s_chunk = 1
    for c in range(1, max_chunk + 1):                      # largest divisor of S
        if S % c == 0:
            s_chunk = c
    # TODO(synk): use pl.cdiv over S with a pl.when-masked tail chunk so prime
    # S does not degrade to one grid step per timestep.

    return pl.pallas_call(
        _rnn_recurrence_kernel,
        out_shape=jax.ShapeDtypeStruct((S, B_pad, H_pad), jnp.float32),
        grid_spec=pltpu.PrefetchScalarGridSpec(
            num_scalar_prefetch=0,
            grid=(S // s_chunk,),
            in_specs=[
                pl.BlockSpec((s_chunk, B_pad, H_pad), lambda c: (c, 0, 0)),
                _maybe_single_buffered((H_pad, H_pad), lambda c: (0, 0)),
            ],
            out_specs=pl.BlockSpec((s_chunk, B_pad, H_pad), lambda c: (c, 0, 0)),
            scratch_shapes=[pltpu.VMEM((B_pad, H_pad), jnp.float32)],
        ),
        # Sequential carry over the sequence axis -> "arbitrary".
        compiler_params=pltpu.CompilerParams(
            dimension_semantics=("arbitrary",),
            vmem_limit_bytes=_VMEM_LIMIT_BYTES),
    )(xp_tm, whh_t)


# ----------------------------------------------------------------------------
# Forward pass (mirror of RNN.forward)
# ----------------------------------------------------------------------------
@jax.jit
def rnn_forward(x_ids, params):
    """emb = Embedding(x); out, hidden = RNN(emb, zeros); out = Linear(out.view(-1,H))
       returns (out: (B*S, dict_size), hidden: (n_layers, B, H))."""
    emb_table = params["embedding"]              # (V, E)
    fc_w = params["fc_w"]                        # (O, H)
    fc_b = params["fc_b"]                        # (O,)
    O, H = fc_w.shape
    V, E = emb_table.shape
    B, S = x_ids.shape

    E_pad = _round_up(E, 128)
    H_pad = _round_up(H, 128)
    O_pad = _round_up(O, 128)
    B_pad = _round_up(B, 8)

    # Embedding gather (plain-JAX glue, dynamic gather) done directly in the
    # time-major layout used by all kernels -> no extra XLA transpose pass.
    emb_tm = jnp.take(emb_table, x_ids.T, axis=0)                   # (S, B, E)
    x_tm = jnp.pad(emb_tm, ((0, 0), (0, B_pad - B), (0, E_pad - E)))  # (S,B_pad,E_pad)

    hiddens = []
    for (w_ih, w_hh, b_ih, b_hh) in params["rnn_layers"]:
        d_in_pad = x_tm.shape[-1]
        # Pad + pre-transpose weights once; fuse the two biases once.
        wih_t = _pad2(w_ih, H_pad, d_in_pad).T                      # (d_in_pad, H_pad)
        whh_t = _pad2(w_hh, H_pad, H_pad).T                         # (H_pad, H_pad)
        bias = jnp.pad(b_ih + b_hh, (0, H_pad - H)).reshape(1, H_pad)

        # Hoisted input projection: one big MXU matmul over all timesteps.
        xp = linear(x_tm.reshape(S * B_pad, d_in_pad), wih_t, bias)
        xp_tm = xp.reshape(S, B_pad, H_pad)

        out_tm = rnn_recurrence(xp_tm, whh_t)                       # (S,B_pad,H_pad)
        hiddens.append(out_tm[S - 1, :B, :H])                       # final hidden
        x_tm = out_tm

    hidden = jnp.stack(hiddens, axis=0)                             # (L, B, H)

    # Back to batch-first (B*S, H_pad), matching PyTorch's
    # out.contiguous().view(-1, hidden_dim), then the vocab projection
    # (activation-resident -> the FC weight streams from HBM exactly once).
    # TODO(synk): fold this transpose into the FC pallas_call via a 3-D
    # in_spec over the time-major slab to save one more HBM round trip.
    out_bf = jnp.transpose(x_tm[:, :B, :], (1, 0, 2)).reshape(B * S, H_pad)
    fc_wt = _pad2(fc_w, O_pad, H_pad).T                             # (H_pad, O_pad)
    fc_brow = jnp.pad(fc_b, (0, O_pad - O)).reshape(1, O_pad)
    logits = linear(out_bf, fc_wt, fc_brow)                         # (B*S, O_pad)
    return logits[:, :O], hidden


# ----------------------------------------------------------------------------
# Deterministic parameter construction (matches module __init__ shapes)
# ----------------------------------------------------------------------------
def make_params(key, dict_size, embedding_size, hidden_dim, n_layers):
    keys = jax.random.split(key, 3 + 4 * n_layers)
    k_iter = iter(keys)

    embedding = jax.random.normal(next(k_iter), (dict_size, embedding_size),
                                  jnp.float32) * 0.1

    rnn_layers = []
    for layer in range(n_layers):
        d_in = embedding_size if layer == 0 else hidden_dim
        w_ih = jax.random.normal(next(k_iter), (hidden_dim, d_in), jnp.float32) * 0.1
        w_hh = jax.random.normal(next(k_iter), (hidden_dim, hidden_dim), jnp.float32) * 0.1
        b_ih = jax.random.normal(next(k_iter), (hidden_dim,), jnp.float32) * 0.1
        b_hh = jax.random.normal(next(k_iter), (hidden_dim,), jnp.float32) * 0.1
        rnn_layers.append((w_ih, w_hh, b_ih, b_hh))

    fc_w = jax.random.normal(next(k_iter), (dict_size, hidden_dim), jnp.float32) * 0.1
    fc_b = jax.random.normal(next(k_iter), (dict_size,), jnp.float32) * 0.1

    return {"embedding": embedding, "rnn_layers": rnn_layers,
            "fc_w": fc_w, "fc_b": fc_b}


# ----------------------------------------------------------------------------
# Pure-JAX reference (correctness check)
# ----------------------------------------------------------------------------
def rnn_forward_ref(x_ids, params):
    emb = jnp.take(params["embedding"], x_ids, axis=0)
    layer_in = emb
    hiddens = []
    for (w_ih, w_hh, b_ih, b_hh) in params["rnn_layers"]:
        B, S, _ = layer_in.shape
        H = w_hh.shape[0]
        h = jnp.zeros((B, H), jnp.float32)
        outs = []
        for t in range(S):
            h = jnp.tanh(layer_in[:, t, :] @ w_ih.T + h @ w_hh.T + b_ih + b_hh)
            outs.append(h)
        layer_in = jnp.stack(outs, axis=1)
        hiddens.append(h)
    hidden = jnp.stack(hiddens, axis=0)
    B, S, H = layer_in.shape
    out = layer_in.reshape(B * S, H) @ params["fc_w"].T + params["fc_b"]
    return out, hidden


# ----------------------------------------------------------------------------
if __name__ == "__main__":
    batch = 2
    seq = 8
    dict_size = 20
    embedding_size = 16
    hidden_dim = 32
    n_layers = 2

    key = jax.random.PRNGKey(0)
    k_params, k_ids = jax.random.split(key)

    params = make_params(k_params, dict_size, embedding_size, hidden_dim, n_layers)
    x_ids = jax.random.randint(k_ids, (batch, seq), 0, dict_size, dtype=jnp.int32)

    out, hidden = rnn_forward(x_ids, params)
    out = jax.block_until_ready(out)
    hidden = jax.block_until_ready(hidden)

    assert out.shape == (batch * seq, dict_size), out.shape
    assert hidden.shape == (n_layers, batch, hidden_dim), hidden.shape

    out_ref, hidden_ref = rnn_forward_ref(x_ids, params)
    assert jnp.allclose(out, out_ref, atol=2e-5, rtol=1e-4)
    assert jnp.allclose(hidden, hidden_ref, atol=2e-5, rtol=1e-4)

    print("KERNEL_OK")
</pallas_src>

<mosaic_0001>
module attributes {stable_mosaic.version = 11 : i64} {
  func.func @_copy_kernel(%arg0: i32, %arg1: memref<8x128xf32, #tpu.memory_space<vmem>>, %arg2: memref<8x128xf32, #tpu.memory_space<vmem>>) attributes {dimension_semantics = [#tpu.dimension_semantics<arbitrary>], iteration_bounds = array<i64: 2>, scalar_prefetch = 0 : i64, scratch_operands = 0 : i64, tpu.core_type = #tpu.core_type<tc>, window_params = [{pipeline_mode = #tpu.pipeline_mode<synchronous>, transform_indices = @transform_0, window_bounds = array<i64: 8, 128>}, {pipeline_mode = #tpu.pipeline_mode<synchronous>, transform_indices = @transform_1, window_bounds = array<i64: 8, 128>}]} {
    %c0 = arith.constant 0 : index
    %c0_0 = arith.constant 0 : index
    %0 = vector.load %arg1[%c0, %c0_0] : memref<8x128xf32, #tpu.memory_space<vmem>>, vector<8x128xf32>
    %c0_1 = arith.constant 0 : index
    %c0_2 = arith.constant 0 : index
    %1 = vector.load %arg2[%c0_1, %c0_2] : memref<8x128xf32, #tpu.memory_space<vmem>>, vector<8x128xf32>
    tpu.vector_store %arg2[%c0_1, %c0_2], %0 {strides = array<i32>} : memref<8x128xf32, #tpu.memory_space<vmem>>, vector<8x128xf32>,
    return
  }
  func.func @transform_0(%arg0: i32) -> (i32, i32) {
    %c0_i32 = arith.constant 0 : i32
    %c0_i32_0 = arith.constant 0 : i32
    %c0_i32_1 = arith.constant 0 : i32
    return %c0_i32, %c0_i32_0 : i32, i32
  }
  func.func @transform_1(%arg0: i32) -> (i32, i32) {
    %c0_i32 = arith.constant 0 : i32
    %c0_i32_0 = arith.constant 0 : i32
    %c0_i32_1 = arith.constant 0 : i32
    return %c0_i32, %c0_i32_0 : i32, i32
  }
}

module attributes {stable_mosaic.version = 11 : i64} {
  func.func @_linear_kernel(%arg0: i32, %arg1: memref<16x128xf32, #tpu.memory_space<vmem>>, %arg2: memref<128x128xf32, #tpu.memory_space<vmem>>, %arg3: memref<1x128xf32, #tpu.memory_space<vmem>>, %arg4: memref<16x128xf32, #tpu.memory_space<vmem>>) attributes {dimension_semantics = [#tpu.dimension_semantics<parallel>], iteration_bounds = array<i64: 1>, scalar_prefetch = 0 : i64, scratch_operands = 0 : i64, tpu.core_type = #tpu.core_type<tc>, window_params = [{pipeline_mode = #tpu.pipeline_mode<synchronous>, transform_indices = @transform_0, window_bounds = array<i64: 16, 128>}, {transform_indices = @transform_1, window_bounds = array<i64: 128, 128>}, {transform_indices = @transform_2, window_bounds = array<i64: 1, 128>}, {transform_indices = @transform_3, window_bounds = array<i64: 16, 128>}]} {
    %c0 = arith.constant 0 : index
    %c0_0 = arith.constant 0 : index
    %0 = vector.load %arg1[%c0, %c0_0] : memref<16x128xf32, #tpu.memory_space<vmem>>, vector<16x128xf32>
    %c0_1 = arith.constant 0 : index
    %c0_2 = arith.constant 0 : index
    %1 = vector.load %arg2[%c0_1, %c0_2] : memref<128x128xf32, #tpu.memory_space<vmem>>, vector<128x128xf32>
    %cst = arith.constant dense<0.000000e+00> : vector<16x128xf32>
    %2 = tpu.matmul %0, %1, %cst {dimension_numbers = #tpu.dot_dimension_numbers<[1], [0], [0], [1], [0, 0, 1, 1], [], []>} : vector<16x128xf32>, vector<128x128xf32>, vector<16x128xf32> -> vector<16x128xf32>
    %c0_3 = arith.constant 0 : index
    %c0_4 = arith.constant 0 : index
    %3 = vector.load %arg3[%c0_3, %c0_4] : memref<1x128xf32, #tpu.memory_space<vmem>>, vector<1x128xf32>
    %4 = vector.broadcast %3 : vector<1x128xf32> to vector<16x128xf32>
    %5 = arith.addf %2, %4 : vector<16x128xf32>
    %c0_5 = arith.constant 0 : index
    %c0_6 = arith.constant 0 : index
    %6 = vector.load %arg4[%c0_5, %c0_6] : memref<16x128xf32, #tpu.memory_space<vmem>>, vector<16x128xf32>
    tpu.vector_store %arg4[%c0_5, %c0_6], %5 {strides = array<i32>} : memref<16x128xf32, #tpu.memory_space<vmem>>, vector<16x128xf32>,
    return
  }
  func.func @transform_0(%arg0: i32) -> (i32, i32) {
    %c0_i32 = arith.constant 0 : i32
    %c0_i32_0 = arith.constant 0 : i32
    %c0_i32_1 = arith.constant 0 : i32
    return %c0_i32, %c0_i32_0 : i32, i32
  }
  func.func @transform_1(%arg0: i32) -> (i32, i32) {
    %c0_i32 = arith.constant 0 : i32
    %c0_i32_0 = arith.constant 0 : i32
    return %c0_i32, %arg0 : i32, i32
  }
  func.func @transform_2(%arg0: i32) -> (i32, i32) {
    %c0_i32 = arith.constant 0 : i32
    %c0_i32_0 = arith.constant 0 : i32
    return %c0_i32, %arg0 : i32, i32
  }
  func.func @transform_3(%arg0: i32) -> (i32, i32) {
    %c0_i32 = arith.constant 0 : i32
    %c0_i32_0 = arith.constant 0 : i32
    return %c0_i32, %arg0 : i32, i32
  }
}

module attributes {stable_mosaic.version = 11 : i64} {
  func.func @_linear_kernel(%arg0: i32, %arg1: memref<64x128xf32, #tpu.memory_space<vmem>>, %arg2: memref<128x128xf32, #tpu.memory_space<vmem>>, %arg3: memref<1x128xf32, #tpu.memory_space<vmem>>, %arg4: memref<64x128xf32, #tpu.memory_space<vmem>>) attributes {dimension_semantics = [#tpu.dimension_semantics<parallel>], iteration_bounds = array<i64: 1>, scalar_prefetch = 0 : i64, scratch_operands = 0 : i64, tpu.core_type = #tpu.core_type<tc>, window_params = [{pipeline_mode = #tpu.pipeline_mode<synchronous>, transform_indices = @transform_0, window_bounds = array<i64: 64, 128>}, {transform_indices = @transform_1, window_bounds = array<i64: 128, 128>}, {transform_indices = @transform_2, window_bounds = array<i64: 1, 128>}, {transform_indices = @transform_3, window_bounds = array<i64: 64, 128>}]} {
    %c0 = arith.constant 0 : index
    %c0_0 = arith.constant 0 : index
    %0 = vector.load %arg1[%c0, %c0_0] : memref<64x128xf32, #tpu.memory_space<vmem>>, vector<64x128xf32>
    %c0_1 = arith.constant 0 : index
    %c0_2 = arith.constant 0 : index
    %1 = vector.load %arg2[%c0_1, %c0_2] : memref<128x128xf32, #tpu.memory_space<vmem>>, vector<128x128xf32>
    %cst = arith.constant dense<0.000000e+00> : vector<64x128xf32>
    %2 = tpu.matmul %0, %1, %cst {dimension_numbers = #tpu.dot_dimension_numbers<[1], [0], [0], [1], [0, 0, 1, 1], [], []>} : vector<64x128xf32>, vector<128x128xf32>, vector<64x128xf32> -> vector<64x128xf32>
    %c0_3 = arith.constant 0 : index
    %c0_4 = arith.constant 0 : index
    %3 = vector.load %arg3[%c0_3, %c0_4] : memref<1x128xf32, #tpu.memory_space<vmem>>, vector<1x128xf32>
    %4 = vector.broadcast %3 : vector<1x128xf32> to vector<64x128xf32>
    %5 = arith.addf %2, %4 : vector<64x128xf32>
    %c0_5 = arith.constant 0 : index
    %c0_6 = arith.constant 0 : index
    %6 = vector.load %arg4[%c0_5, %c0_6] : memref<64x128xf32, #tpu.memory_space<vmem>>, vector<64x128xf32>
    tpu.vector_store %arg4[%c0_5, %c0_6], %5 {strides = array<i32>} : memref<64x128xf32, #tpu.memory_space<vmem>>, vector<64x128xf32>,
    return
  }
  func.func @transform_0(%arg0: i32) -> (i32, i32) {
    %c0_i32 = arith.constant 0 : i32
    %c0_i32_0 = arith.constant 0 : i32
    %c0_i32_1 = arith.constant 0 : i32
    return %c0_i32, %c0_i32_0 : i32, i32
  }
  func.func @transform_1(%arg0: i32) -> (i32, i32) {
    %c0_i32 = arith.constant 0 : i32
    %c0_i32_0 = arith.constant 0 : i32
    return %c0_i32, %arg0 : i32, i32
  }
  func.func @transform_2(%arg0: i32) -> (i32, i32) {
    %c0_i32 = arith.constant 0 : i32
    %c0_i32_0 = arith.constant 0 : i32
    return %c0_i32, %arg0 : i32, i32
  }
  func.func @transform_3(%arg0: i32) -> (i32, i32) {
    %c0_i32 = arith.constant 0 : i32
    %c0_i32_0 = arith.constant 0 : i32
    return %c0_i32, %arg0 : i32, i32
  }
}

module attributes {stable_mosaic.version = 11 : i64} {
  func.func @_rnn_recurrence_kernel(%arg0: i32, %arg1: memref<8x8x128xf32, #tpu.memory_space<vmem>>, %arg2: memref<128x128xf32, #tpu.memory_space<vmem>>, %arg3: memref<8x8x128xf32, #tpu.memory_space<vmem>>, %arg4: memref<8x128xf32, #tpu.memory_space<vmem>>) attributes {dimension_semantics = [#tpu.dimension_semantics<arbitrary>], iteration_bounds = array<i64: 1>, scalar_prefetch = 0 : i64, scratch_operands = 1 : i64, tpu.core_type = #tpu.core_type<tc>, window_params = [{transform_indices = @transform_0, window_bounds = array<i64: 8, 8, 128>}, {pipeline_mode = #tpu.pipeline_mode<synchronous>, transform_indices = @transform_1, window_bounds = array<i64: 128, 128>}, {transform_indices = @transform_2, window_bounds = array<i64: 8, 8, 128>}]} {
    %c0_i32 = arith.constant 0 : i32
    %0 = arith.cmpi eq, %arg0, %c0_i32 : i32
    %1 = arith.extui %0 : i1 to i32
    %c0_i32_0 = arith.constant 0 : i32
    %2 = arith.cmpi ne, %1, %c0_i32_0 : i32
    scf.if %2 {
      %cst_46 = arith.constant 0.000000e+00 : f32
      %86 = vector.broadcast %cst_46 : f32 to vector<8x128xf32>
      %c0_47 = arith.constant 0 : index
      %c0_48 = arith.constant 0 : index
      %87 = vector.load %arg4[%c0_47, %c0_48] : memref<8x128xf32, #tpu.memory_space<vmem>>, vector<8x128xf32>
      tpu.vector_store %arg4[%c0_47, %c0_48], %86 {strides = array<i32>} : memref<8x128xf32, #tpu.memory_space<vmem>>, vector<8x128xf32>,
    } else {
    }
    %c0 = arith.constant 0 : index
    %c0_1 = arith.constant 0 : index
    %3 = vector.load %arg2[%c0, %c0_1] : memref<128x128xf32, #tpu.memory_space<vmem>>, vector<128x128xf32>
    %c0_2 = arith.constant 0 : index
    %c0_3 = arith.constant 0 : index
    %4 = vector.load %arg4[%c0_2, %c0_3] : memref<8x128xf32, #tpu.memory_space<vmem>>, vector<8x128xf32>
    %c0_i32_4 = arith.constant 0 : i32
    %5 = arith.index_cast %c0_i32_4 : i32 to index
    %c0_5 = arith.constant 0 : index
    %c0_6 = arith.constant 0 : index
    %6 = vector.load %arg1[%5, %c0_5, %c0_6] : memref<8x8x128xf32, #tpu.memory_space<vmem>>, vector<1x8x128xf32>
    %7 = vector.shape_cast %6 : vector<1x8x128xf32> to vector<8x128xf32>
    %cst = arith.constant dense<0.000000e+00> : vector<8x128xf32>
    %8 = tpu.matmul %4, %3, %cst {dimension_numbers = #tpu.dot_dimension_numbers<[1], [0], [0], [1], [0, 0, 1, 1], [], []>} : vector<8x128xf32>, vector<128x128xf32>, vector<8x128xf32> -> vector<8x128xf32>
    %9 = arith.addf %7, %8 : vector<8x128xf32>
    %10 = math.tanh %9 : vector<8x128xf32>
    %11 = arith.index_cast %c0_i32_4 : i32 to index
    %c0_7 = arith.constant 0 : index
    %c0_8 = arith.constant 0 : index
    %12 = vector.load %arg3[%11, %c0_7, %c0_8] : memref<8x8x128xf32, #tpu.memory_space<vmem>>, vector<1x8x128xf32>
    %13 = vector.shape_cast %12 : vector<1x8x128xf32> to vector<8x128xf32>
    %14 = vector.shape_cast %10 : vector<8x128xf32> to vector<1x8x128xf32>
    tpu.vector_store %arg3[%11, %c0_7, %c0_8], %14 {strides = array<i32>} : memref<8x8x128xf32, #tpu.memory_space<vmem>>, vector<1x8x128xf32>,
    %c1_i32 = arith.constant 1 : i32
    %15 = arith.index_cast %c1_i32 : i32 to index
    %c0_9 = arith.constant 0 : index
    %c0_10 = arith.constant 0 : index
    %16 = vector.load %arg1[%15, %c0_9, %c0_10] : memref<8x8x128xf32, #tpu.memory_space<vmem>>, vector<1x8x128xf32>
    %17 = vector.shape_cast %16 : vector<1x8x128xf32> to vector<8x128xf32>
    %cst_11 = arith.constant dense<0.000000e+00> : vector<8x128xf32>
    %18 = tpu.matmul %10, %3, %cst_11 {dimension_numbers = #tpu.dot_dimension_numbers<[1], [0], [0], [1], [0, 0, 1, 1], [], []>} : vector<8x128xf32>, vector<128x128xf32>, vector<8x128xf32> -> vector<8x128xf32>
    %19 = arith.addf %17, %18 : vector<8x128xf32>
    %20 = math.tanh %19 : vector<8x128xf32>
    %21 = arith.index_cast %c1_i32 : i32 to index
    %c0_12 = arith.constant 0 : index
    %c0_13 = arith.constant 0 : index
    %22 = vector.load %arg3[%21, %c0_12, %c0_13] : memref<8x8x128xf32, #tpu.memory_space<vmem>>, vector<1x8x128xf32>
    %23 = vector.shape_cast %22 : vector<1x8x128xf32> to vector<8x128xf32>
    %24 = vector.shape_cast %20 : vector<8x128xf32> to vector<1x8x128xf32>
    tpu.vector_store %arg3[%21, %c0_12, %c0_13], %24 {strides = array<i32>} : memref<8x8x128xf32, #tpu.memory_space<vmem>>, vector<1x8x128xf32>,
    %c2_i32 = arith.constant 2 : i32
    %25 = arith.index_cast %c2_i32 : i32 to index
    %c0_14 = arith.constant 0 : index
    %c0_15 = arith.constant 0 : index
    %26 = vector.load %arg1[%25, %c0_14, %c0_15] : memref<8x8x128xf32, #tpu.memory_space<vmem>>, vector<1x8x128xf32>
    %27 = vector.shape_cast %26 : vector<1x8x128xf32> to vector<8x128xf32>
    %cst_16 = arith.constant dense<0.000000e+00> : vector<8x128xf32>
    %28 = tpu.matmul %20, %3, %cst_16 {dimension_numbers = #tpu.dot_dimension_numbers<[1], [0], [0], [1], [0, 0, 1, 1], [], []>} : vector<8x128xf32>, vector<128x128xf32>, vector<8x128xf32> -> vector<8x128xf32>
    %29 = arith.addf %27, %28 : vector<8x128xf32>
    %30 = math.tanh %29 : vector<8x128xf32>
    %31 = arith.index_cast %c2_i32 : i32 to index
    %c0_17 = arith.constant 0 : index
    %c0_18 = arith.constant 0 : index
    %32 = vector.load %arg3[%31, %c0_17, %c0_18] : memref<8x8x128xf32, #tpu.memory_space<vmem>>, vector<1x8x128xf32>
    %33 = vector.shape_cast %32 : vector<1x8x128xf32> to vector<8x128xf32>
    %34 = vector.shape_cast %30 : vector<8x128xf32> to vector<1x8x128xf32>
    tpu.vector_store %arg3[%31, %c0_17, %c0_18], %34 {strides = array<i32>} : memref<8x8x128xf32, #tpu.memory_space<vmem>>, vector<1x8x128xf32>,
    %c3_i32 = arith.constant 3 : i32
    %35 = arith.index_cast %c3_i32 : i32 to index
    %c0_19 = arith.constant 0 : index
    %c0_20 = arith.constant 0 : index
    %36 = vector.load %arg1[%35, %c0_19, %c0_20] : memref<8x8x128xf32, #tpu.memory_space<vmem>>, vector<1x8x128xf32>
    %37 = vector.shape_cast %36 : vector<1x8x128xf32> to vector<8x128xf32>
    %cst_21 = arith.constant dense<0.000000e+00> : vector<8x128xf32>
    %38 = tpu.matmul %30, %3, %cst_21 {dimension_numbers = #tpu.dot_dimension_numbers<[1], [0], [0], [1], [0, 0, 1, 1], [], []>} : vector<8x128xf32>, vector<128x128xf32>, vector<8x128xf32> -> vector<8x128xf32>
    %39 = arith.addf %37, %38 : vector<8x128xf32>
    %40 = math.tanh %39 : vector<8x128xf32>
    %41 = arith.index_cast %c3_i32 : i32 to index
    %c0_22 = arith.constant 0 : index
    %c0_23 = arith.constant 0 : index
    %42 = vector.load %arg3[%41, %c0_22, %c0_23] : memref<8x8x128xf32, #tpu.memory_space<vmem>>, vector<1x8x128xf32>
    %43 = vector.shape_cast %42 : vector<1x8x128xf32> to vector<8x128xf32>
    %44 = vector.shape_cast %40 : vector<8x128xf32> to vector<1x8x128xf32>
    tpu.vector_store %arg3[%41, %c0_22, %c0_23], %44 {strides = array<i32>} : memref<8x8x128xf32, #tpu.memory_space<vmem>>, vector<1x8x128xf32>,
    %c4_i32 = arith.constant 4 : i32
    %45 = arith.index_cast %c4_i32 : i32 to index
    %c0_24 = arith.constant 0 : index
    %c0_25 = arith.constant 0 : index
    %46 = vector.load %arg1[%45, %c0_24, %c0_25] : memref<8x8x128xf32, #tpu.memory_space<vmem>>, vector<1x8x128xf32>
    %47 = vector.shape_cast %46 : vector<1x8x128xf32> to vector<8x128xf32>
    %cst_26 = arith.constant dense<0.000000e+00> : vector<8x128xf32>
    %48 = tpu.matmul %40, %3, %cst_26 {dimension_numbers = #tpu.dot_dimension_numbers<[1], [0], [0], [1], [0, 0, 1, 1], [], []>} : vector<8x128xf32>, vector<128x128xf32>, vector<8x128xf32> -> vector<8x128xf32>
    %49 = arith.addf %47, %48 : vector<8x128xf32>
    %50 = math.tanh %49 : vector<8x128xf32>
    %51 = arith.index_cast %c4_i32 : i32 to index
    %c0_27 = arith.constant 0 : index
    %c0_28 = arith.constant 0 : index
    %52 = vector.load %arg3[%51, %c0_27, %c0_28] : memref<8x8x128xf32, #tpu.memory_space<vmem>>, vector<1x8x128xf32>
    %53 = vector.shape_cast %52 : vector<1x8x128xf32> to vector<8x128xf32>
    %54 = vector.shape_cast %50 : vector<8x128xf32> to vector<1x8x128xf32>
    tpu.vector_store %arg3[%51, %c0_27, %c0_28], %54 {strides = array<i32>} : memref<8x8x128xf32, #tpu.memory_space<vmem>>, vector<1x8x128xf32>,
    %c5_i32 = arith.constant 5 : i32
    %55 = arith.index_cast %c5_i32 : i32 to index
    %c0_29 = arith.constant 0 : index
    %c0_30 = arith.constant 0 : index
    %56 = vector.load %arg1[%55, %c0_29, %c0_30] : memref<8x8x128xf32, #tpu.memory_space<vmem>>, vector<1x8x128xf32>
    %57 = vector.shape_cast %56 : vector<1x8x128xf32> to vector<8x128xf32>
    %cst_31 = arith.constant dense<0.000000e+00> : vector<8x128xf32>
    %58 = tpu.matmul %50, %3, %cst_31 {dimension_numbers = #tpu.dot_dimension_numbers<[1], [0], [0], [1], [0, 0, 1, 1], [], []>} : vector<8x128xf32>, vector<128x128xf32>, vector<8x128xf32> -> vector<8x128xf32>
    %59 = arith.addf %57, %58 : vector<8x128xf32>
    %60 = math.tanh %59 : vector<8x128xf32>
    %61 = arith.index_cast %c5_i32 : i32 to index
    %c0_32 = arith.constant 0 : index
    %c0_33 = arith.constant 0 : index
    %62 = vector.load %arg3[%61, %c0_32, %c0_33] : memref<8x8x128xf32, #tpu.memory_space<vmem>>, vector<1x8x128xf32>
    %63 = vector.shape_cast %62 : vector<1x8x128xf32> to vector<8x128xf32>
    %64 = vector.shape_cast %60 : vector<8x128xf32> to vector<1x8x128xf32>
    tpu.vector_store %arg3[%61, %c0_32, %c0_33], %64 {strides = array<i32>} : memref<8x8x128xf32, #tpu.memory_space<vmem>>, vector<1x8x128xf32>,
    %c6_i32 = arith.constant 6 : i32
    %65 = arith.index_cast %c6_i32 : i32 to index
    %c0_34 = arith.constant 0 : index
    %c0_35 = arith.constant 0 : index
    %66 = vector.load %arg1[%65, %c0_34, %c0_35] : memref<8x8x128xf32, #tpu.memory_space<vmem>>, vector<1x8x128xf32>
    %67 = vector.shape_cast %66 : vector<1x8x128xf32> to vector<8x128xf32>
    %cst_36 = arith.constant dense<0.000000e+00> : vector<8x128xf32>
    %68 = tpu.matmul %60, %3, %cst_36 {dimension_numbers = #tpu.dot_dimension_numbers<[1], [0], [0], [1], [0, 0, 1, 1], [], []>} : vector<8x128xf32>, vector<128x128xf32>, vector<8x128xf32> -> vector<8x128xf32>
    %69 = arith.addf %67, %68 : vector<8x128xf32>
    %70 = math.tanh %69 : vector<8x128xf32>
    %71 = arith.index_cast %c6_i32 : i32 to index
    %c0_37 = arith.constant 0 : index
    %c0_38 = arith.constant 0 : index
    %72 = vector.load %arg3[%71, %c0_37, %c0_38] : memref<8x8x128xf32, #tpu.memory_space<vmem>>, vector<1x8x128xf32>
    %73 = vector.shape_cast %72 : vector<1x8x128xf32> to vector<8x128xf32>
    %74 = vector.shape_cast %70 : vector<8x128xf32> to vector<1x8x128xf32>
    tpu.vector_store %arg3[%71, %c0_37, %c0_38], %74 {strides = array<i32>} : memref<8x8x128xf32, #tpu.memory_space<vmem>>, vector<1x8x128xf32>,
    %c7_i32 = arith.constant 7 : i32
    %75 = arith.index_cast %c7_i32 : i32 to index
    %c0_39 = arith.constant 0 : index
    %c0_40 = arith.constant 0 : index
    %76 = vector.load %arg1[%75, %c0_39, %c0_40] : memref<8x8x128xf32, #tpu.memory_space<vmem>>, vector<1x8x128xf32>
    %77 = vector.shape_cast %76 : vector<1x8x128xf32> to vector<8x128xf32>
    %cst_41 = arith.constant dense<0.000000e+00> : vector<8x128xf32>
    %78 = tpu.matmul %70, %3, %cst_41 {dimension_numbers = #tpu.dot_dimension_numbers<[1], [0], [0], [1], [0, 0, 1, 1], [], []>} : vector<8x128xf32>, vector<128x128xf32>, vector<8x128xf32> -> vector<8x128xf32>
    %79 = arith.addf %77, %78 : vector<8x128xf32>
    %80 = math.tanh %79 : vector<8x128xf32>
    %81 = arith.index_cast %c7_i32 : i32 to index
    %c0_42 = arith.constant 0 : index
    %c0_43 = arith.constant 0 : index
    %82 = vector.load %arg3[%81, %c0_42, %c0_43] : memref<8x8x128xf32, #tpu.memory_space<vmem>>, vector<1x8x128xf32>
    %83 = vector.shape_cast %82 : vector<1x8x128xf32> to vector<8x128xf32>
    %84 = vector.shape_cast %80 : vector<8x128xf32> to vector<1x8x128xf32>
    tpu.vector_store %arg3[%81, %c0_42, %c0_43], %84 {strides = array<i32>} : memref<8x8x128xf32, #tpu.memory_space<vmem>>, vector<1x8x128xf32>,
    %c8_i32 = arith.constant 8 : i32
    %c0_44 = arith.constant 0 : index
    %c0_45 = arith.constant 0 : index
    %85 = vector.load %arg4[%c0_44, %c0_45] : memref<8x128xf32, #tpu.memory_space<vmem>>, vector<8x128xf32>
    tpu.vector_store %arg4[%c0_44, %c0_45], %80 {strides = array<i32>} : memref<8x128xf32, #tpu.memory_space<vmem>>, vector<8x128xf32>,
    return
  }
  func.func @transform_0(%arg0: i32) -> (i32, i32, i32) {
    %c0_i32 = arith.constant 0 : i32
    %c0_i32_0 = arith.constant 0 : i32
    %c0_i32_1 = arith.constant 0 : i32
    return %arg0, %c0_i32, %c0_i32_0 : i32, i32, i32
  }
  func.func @transform_1(%arg0: i32) -> (i32, i32) {
    %c0_i32 = arith.constant 0 : i32
    %c0_i32_0 = arith.constant 0 : i32
    %c0_i32_1 = arith.constant 0 : i32
    return %c0_i32, %c0_i32_0 : i32, i32
  }
  func.func @transform_2(%arg0: i32) -> (i32, i32, i32) {
    %c0_i32 = arith.constant 0 : i32
    %c0_i32_0 = arith.constant 0 : i32
    %c0_i32_1 = arith.constant 0 : i32
    return %arg0, %c0_i32, %c0_i32_0 : i32, i32, i32
  }
}

</mosaic_0001>

<bundles_post_ra>
// kernel: tpu_custom_call.1
= control target key start
LH: loop header
LB: loop body
LE: loop exit
PB: predicated region body
PF: predicated region fallthrough
CT: control target
= control target key end

     0   :  { %6 = vsyncpa [#allocation3], 0  ;;  %s304_s0 = inlined_call_operand.hbm [shape: f32[8,128], index: 0, kind: input, shape index: {}]   ;;  %s305_s1 = inlined_call_operand.hbm [shape: f32[8,128], index: 1, kind: output, shape index: {}]  }
   0x1   :  { %7 = vsyncpa [#allocation4], 0  ;;  %s257_s6 = smov 0  }
   0x2 LB: > { %s144_s7 = sadd.s32 4294967295, %s243_s6   ;;  %p145_p0 = scmp.ge.s32.totalorder %s243_s6, 1  ;;  %s243_s6 = sphi %s257_s6, %s13_s6  }
   0x3   : > { %p60_p1 = scmp.lt.s32.totalorder %s243_s6, 3  ;;  %p269_p3 = scmp.eq.s32.totalorder %s144_s7, 0 }
   0x4   : > { %s245_s10 = smov [#allocation2]  }
   0x5   : > { %p265_p2 = pnand %p145_p0, %p60_p1  ;;  %s73_s11 = sshll.u32 %s245_s10, 4  ;;  %s74_s11 = int_to_ptr.vmem [resolvable:$true] %s73_s11 }
   0x6   : > { %s190_s12 = scalar_lea.vmem %s74_s11, 128  ;;  %p198_p10 = scmp.lt.s32.totalorder %s74_s11, %s74_s11 }
   0x7   : > { %p161_p4 = pneg %p265_p2  ;;  %p191_p7 = scmp.ne.s32.totalorder %s74_s11, %s190_s12 }
   0x8   : > { %p199_p11 = scmp.lt.s32.totalorder %s190_s12, %s190_s12 }
   0x9   : > { %p162_p5 = pnand %p269_p3, %p161_p4 }
   0xa   : > { %p200_p12 = por %p199_p11, %p198_p10 }
   0xb   : > { %p181_p6 = pneg %p162_p5 }
   0xd   : > { %p193_p8 = pnand %p191_p7, %p181_p6 }
   0xf   : > { %p194_p9 = pneg %p193_p8 }
  0x11   : > { %p201_p13 = pnand %p200_p12, %p194_p9 }
  0x13   : > { %204 = shalt.err (!%p201_p13)
}
  0x14   : > { %164 = dma.hbm_to_vmem [thread:$0]  (!%p162_p5), %s304_s0, 128, %s74_s11, [#allocation3]  }
  0x15   : > { %86 = sbr.rel (%p265_p2) target bundleno = 42 (0x2a), region = 24 }
  0x1a   : > { %234 = dma.done.wait (%p269_p3), [#allocation3], 128  }
  0x1b   : > { %236 = vsyncadd (%p269_p3), [#allocation3], 4294967168  ;;  %s246_s15 = smov [#allocation5]   ;;  %p286_p0 = scmp.eq.s32.totalorder %s144_s7, 1  ;;  %v96_v0 = vld [vmem:[#allocation2] sm:$0xff] }
  0x1c   : > { %s105_s16 = sshll.u32 %s246_s15, 4  ;;  %97 = vst [vmem:[#allocation5] sm:$0xff] %v96_v0  ;;  %s106_s16 = int_to_ptr.vmem [resolvable:$true] %s105_s16 }
  0x1d   : > { %s205_s18 = scalar_lea.vmem %s106_s16, 128  ;;  %p212_p5 = scmp.lt.s32.totalorder %s106_s16, %s106_s16 }
  0x1e   : > { %p206_p1 = scmp.ne.s32.totalorder %s106_s16, %s205_s18  ;;  %p213_p6 = scmp.lt.s32.totalorder %s205_s18, %s205_s18 }
  0x20   : > { %p207_p2 = pnand %p206_p1, %p286_p0  ;;  %p214_p7 = por %p213_p6, %p212_p5 }
  0x22   : > { %p208_p4 = pneg %p207_p2 }
  0x24   : > { %p215_p8 = pnand %p214_p7, %p208_p4 }
  0x26   : > { %218 = shalt.err (!%p215_p8)
}
  0x27   : > { %158 = dma.vmem_to_hbm [thread:$0]  (%p286_p0), %s106_s16, 128, %s305_s1, [#allocation4]  }
  0x28   : > { %238 = dma.done.wait (%p286_p0), [#allocation4], 128  }
  0x29   : > { %240 = vsyncadd (%p286_p0), [#allocation4], 4294967168 }
  0x2a PF: > { %s13_s6 = sadd.s32 1, %s243_s6  }
  0x2b   : > { %p10_p3 = scmp.ge.s32.totalorder %s13_s6, 4  }
  0x2d   :  { %12 = sbr.rel (!%p10_p3) target bundleno = 2 (0x2), region = 53 }
  0x32   :  { %118 = vsyncpa [#allocation3], 1 }
  0x33   :  { %120 = vsyncpa [#allocation3 + $0x1], 1 }
  0x34   :  { %121 = vsyncpa [#allocation4], 1 }
  0x35   :  { %123 = vsyncpa [#allocation4 + $0x1], 1 }

// kernel: rnn_forward.9
= control target key start
LH: loop header
LB: loop body
LE: loop exit
PB: predicated region body
PF: predicated region fallthrough
CT: control target
= control target key end

     0   :  { %s295_s0 = inlined_call_operand.vmem [shape: f32[16,128], index: 0, kind: input, shape index: {}]   ;;  %s296_s1 = inlined_call_operand.vmem [shape: f32[128,128], index: 1, kind: input, shape index: {}]   ;;  %s297_s2 = inlined_call_operand.vmem [shape: f32[1,128], index: 2, kind: input, shape index: {}]   ;;  %s298_s3 = inlined_call_operand.hbm [shape: f32[16,128], index: 3, kind: output, shape index: {}]  }
   0x1   :  { %v32_v0 = vld [vmem:[%s296_s1 + $0x78] sm:$0xff]  ;;  %v31_v1 = vld [vmem:[%s296_s1 + $0x70] sm:$0xff]  ;;  %v30_v2 = vld [vmem:[%s296_s1 + $0x68] sm:$0xff] }
   0x2   :  { %152 = vmatprep.subr.mxu0 %v32_v0  ;;  %v29_v3 = vld [vmem:[%s296_s1 + $0x60] sm:$0xff]  ;;  %v28_v5 = vld [vmem:[%s296_s1 + $0x58] sm:$0xff] }
   0x3   :  { %153 = vmatpush3.msra.mxu0 %v32_v0  ;;  %v15_v4 = vld [vmem:[%s295_s0] sm:$0xff] }
   0x4   :  { %154 = vmatprep.subr.mxu0 %v31_v1  ;;  %184 = vmatprep.mubr.f32.mxu0 %v15_v4 }
   0x5   :  { %155 = vmatpush3.msra.mxu0 %v31_v1 }
   0x6   :  { %156 = vmatprep.subr.mxu0 %v30_v2 }
   0x7   :  { %157 = vmatpush3.msra.mxu0 %v30_v2 }
   0x8   :  { %8 = vsyncpa [#allocation3], 0  ;;  %158 = vmatprep.subr.mxu0 %v29_v3  ;;  %v27_v6 = vld [vmem:[%s296_s1 + $0x50] sm:$0xff]  ;;  %v26_v7 = vld [vmem:[%s296_s1 + $0x48] sm:$0xff]  ;;  %s212_s23 = smov [#allocation2]  }
   0x9   :  { %159 = vmatpush3.msra.mxu0 %v29_v3  ;;  %v25_v8 = vld [vmem:[%s296_s1 + $0x40] sm:$0xff]  ;;  %v24_v9 = vld [vmem:[%s296_s1 + $0x38] sm:$0xff]  ;;  %v23_v10 = vld [vmem:[%s296_s1 + $0x30] sm:$0xff]  ;;  %s122_s24 = sshll.u32 %s212_s23, 4  ;;  %s123_s24 = int_to_ptr.vmem [resolvable:$true] %s122_s24 }
   0xa   :  { %160 = vmatprep.subr.mxu0 %v28_v5  ;;  %v22_v11 = vld [vmem:[%s296_s1 + $0x28] sm:$0xff]  ;;  %v21_v12 = vld [vmem:[%s296_s1 + $0x20] sm:$0xff]  ;;  %v20_v13 = vld [vmem:[%s296_s1 + $0x18] sm:$0xff]  ;;  %p195_p1 = scmp.lt.s32.totalorder %s123_s24, %s123_s24 }
   0xb   :  { %161 = vmatpush3.msra.mxu0 %v28_v5  ;;  %v19_v14 = vld [vmem:[%s296_s1 + $0x10] sm:$0xff]  ;;  %v18_v15 = vld [vmem:[%s296_s1 + $0x8] sm:$0xff]  ;;  %v17_v16 = vld [vmem:[%s296_s1] sm:$0xff]  ;;  %s190_s1 = scalar_lea.vmem %s123_s24, 256 }
   0xc   :  { %162 = vmatprep.subr.mxu0 %v27_v6  ;;  %v16_v17 = vld [vmem:[%s295_s0 + $0x8] sm:$0xff]  ;;  %v133_v18 = vld [vmem:[%s297_s2] ss:$0 sm:$0xff]  ;;  %p191_p0 = scmp.ne.s32.totalorder %s123_s24, %s190_s1  ;;  %p196_p2 = scmp.lt.s32.totalorder %s190_s1, %s190_s1 }
   0xd   :  { %163 = vmatpush3.msra.mxu0 %v27_v6 }
   0xe   :  { %164 = vmatprep.subr.mxu0 %v26_v7  ;;  %p197_p3 = por %p196_p2, %p195_p1 }
   0xf   :  { %165 = vmatpush3.msra.mxu0 %v26_v7 }
  0x10   :  { %166 = vmatprep.subr.mxu0 %v25_v8  ;;  %p198_p4 = pnand %p197_p3, %p191_p0 }
  0x11   :  { %167 = vmatpush3.msra.mxu0 %v25_v8 }
  0x12   :  { %168 = vmatprep.subr.mxu0 %v24_v9 }
  0x13   :  { %169 = vmatpush3.msra.mxu0 %v24_v9 }
  0x14   :  { %170 = vmatprep.subr.mxu0 %v23_v10 }
  0x15   :  { %171 = vmatpush3.msra.mxu0 %v23_v10 }
  0x16   :  { %172 = vmatprep.subr.mxu0 %v22_v11 }
  0x17   :  { %173 = vmatpush3.msra.mxu0 %v22_v11 }
  0x18   :  { %174 = vmatprep.subr.mxu0 %v21_v12 }
  0x19   :  { %175 = vmatpush3.msra.mxu0 %v21_v12 }
  0x1a   :  { %176 = vmatprep.subr.mxu0 %v20_v13 }
  0x1b   :  { %177 = vmatpush3.msra.mxu0 %v20_v13 }
  0x1c   :  { %178 = vmatprep.subr.mxu0 %v19_v14 }
  0x1d   :  { %179 = vmatpush3.msra.mxu0 %v19_v14 }
  0x1e   :  { %180 = vmatprep.subr.mxu0 %v18_v15 }
  0x1f   :  { %181 = vmatpush3.msra.mxu0 %v18_v15 }
  0x20   :  { %182 = vmatprep.subr.mxu0 %v17_v16 }
  0x21   :  { %183 = vmatpush3.msra.mxu0 %v17_v16 }
  0x22   :  { %185 = vmatmul.mubr.f32.vlgmr.msra.gmra.mxu0 %v16_v17 }
  0xe2   :  { %v186_v19 = vpop.f32.mrf.mxu0 }
  0xe3   :  { %v112_v20 = vadd.f32 %v186_v19, %v133_v18 }
  0xe4   :  { %v106_v21 = vpop.f32.mrf.mxu0 }
  0xe5   :  { %116 = vst [vmem:[#allocation2 + $0x8] sm:$0xff] %v112_v20  ;;  %v107_v22 = vadd.f32 %v133_v18, %v106_v21 }
  0xe7   :  { %115 = vst [vmem:[#allocation2] sm:$0xff] %v107_v22 }
  0xe8   :  { %201 = shalt.err (!%p198_p4)
}
  0xe9   :  { %s213_s0 = smov 128   ;;  %s214_s25 = smov 8  }
  0xea   :  { %128 = dma.vmem_to_hbm [thread:$0]  %s123_s24, 256, %s298_s3, [#allocation3], %s213_s0, %s213_s0, %s214_s25  }
  0xeb   :  { %210 = dma.done.wait [#allocation3], 256  }
  0xec   :  { %211 = vsyncadd [#allocation3], 4294967040 }
  0xed   :  { %132 = vsyncpa [#allocation3], 1 }

// kernel: rnn_forward.5
= control target key start
LH: loop header
LB: loop body
LE: loop exit
PB: predicated region body
PF: predicated region fallthrough
CT: control target
= control target key end

     0   :  { %s382_s1 = inlined_call_operand.vmem [shape: f32[128,128], index: 1, kind: input, shape index: {}]   ;;  %s383_s0 = inlined_call_operand.vmem [shape: f32[64,128], index: 0, kind: input, shape index: {}]   ;;  %s384_s2 = inlined_call_operand.vmem [shape: f32[1,128], index: 2, kind: input, shape index: {}]   ;;  %s385_s3 = inlined_call_operand.vmem [shape: f32[64,128], index: 3, kind: output, shape index: {}]  }
   0x1   :  { %v37_v0 = vld [vmem:[%s382_s1 + $0x78] sm:$0xff]  ;;  %v36_v1 = vld [vmem:[%s382_s1 + $0x70] sm:$0xff]  ;;  %v35_v2 = vld [vmem:[%s382_s1 + $0x68] sm:$0xff] }
   0x2   :  { %187 = vmatprep.subr.mxu0 %v37_v0  ;;  %231 = vmatprep.subr.mxu1 %v37_v0  ;;  %v34_v3 = vld [vmem:[%s382_s1 + $0x60] sm:$0xff]  ;;  %v33_v4 = vld [vmem:[%s382_s1 + $0x58] sm:$0xff]  ;;  %v32_v5 = vld [vmem:[%s382_s1 + $0x50] sm:$0xff] }
   0x3   :  { %188 = vmatpush3.msra.mxu0 %v37_v0  ;;  %247 = vmatpush3.msra.mxu1 %v37_v0  ;;  %v31_v6 = vld [vmem:[%s382_s1 + $0x48] sm:$0xff]  ;;  %v30_v7 = vld [vmem:[%s382_s1 + $0x40] sm:$0xff]  ;;  %v29_v8 = vld [vmem:[%s382_s1 + $0x38] sm:$0xff] }
   0x4   :  { %189 = vmatprep.subr.mxu0 %v36_v1  ;;  %232 = vmatprep.subr.mxu1 %v36_v1  ;;  %v28_v9 = vld [vmem:[%s382_s1 + $0x30] sm:$0xff]  ;;  %v27_v10 = vld [vmem:[%s382_s1 + $0x28] sm:$0xff]  ;;  %v26_v11 = vld [vmem:[%s382_s1 + $0x20] sm:$0xff] }
   0x5   :  { %190 = vmatpush3.msra.mxu0 %v36_v1  ;;  %248 = vmatpush3.msra.mxu1 %v36_v1  ;;  %v25_v12 = vld [vmem:[%s382_s1 + $0x18] sm:$0xff]  ;;  %v24_v13 = vld [vmem:[%s382_s1 + $0x10] sm:$0xff]  ;;  %v23_v14 = vld [vmem:[%s382_s1 + $0x8] sm:$0xff] }
   0x6   :  { %191 = vmatprep.subr.mxu0 %v35_v2  ;;  %233 = vmatprep.subr.mxu1 %v35_v2  ;;  %v22_v15 = vld [vmem:[%s382_s1] sm:$0xff]  ;;  %v15_v18 = vld [vmem:[%s383_s0 + $0x8] sm:$0xff]  ;;  %v16_v20 = vld [vmem:[%s383_s0 + $0x10] sm:$0xff] }
   0x7   :  { %192 = vmatpush3.msra.mxu0 %v35_v2  ;;  %249 = vmatpush3.msra.mxu1 %v35_v2  ;;  %v14_v16 = vld [vmem:[%s383_s0] sm:$0xff]  ;;  %v19_v19 = vld [vmem:[%s383_s0 + $0x28] sm:$0xff]  ;;  %v20_v21 = vld [vmem:[%s383_s0 + $0x30] sm:$0xff] }
   0x8   :  { %193 = vmatprep.subr.mxu0 %v34_v3  ;;  %234 = vmatprep.subr.mxu1 %v34_v3  ;;  %v18_v17 = vld [vmem:[%s383_s0 + $0x20] sm:$0xff]  ;;  %v17_v22 = vld [vmem:[%s383_s0 + $0x18] sm:$0xff] }
   0x9   :  { %194 = vmatpush3.msra.mxu0 %v34_v3  ;;  %250 = vmatpush3.msra.mxu1 %v34_v3  ;;  %v21_v23 = vld [vmem:[%s383_s0 + $0x38] sm:$0xff]  ;;  %v162_v24 = vld [vmem:[%s384_s2] ss:$0 sm:$0xff] }
   0xa   :  { %195 = vmatprep.subr.mxu0 %v33_v4  ;;  %235 = vmatprep.subr.mxu1 %v33_v4 }
   0xb   :  { %196 = vmatpush3.msra.mxu0 %v33_v4  ;;  %251 = vmatpush3.msra.mxu1 %v33_v4 }
   0xc   :  { %197 = vmatprep.subr.mxu0 %v32_v5  ;;  %236 = vmatprep.subr.mxu1 %v32_v5 }
   0xd   :  { %198 = vmatpush3.msra.mxu0 %v32_v5  ;;  %252 = vmatpush3.msra.mxu1 %v32_v5 }
   0xe   :  { %199 = vmatprep.subr.mxu0 %v31_v6  ;;  %237 = vmatprep.subr.mxu1 %v31_v6 }
   0xf   :  { %200 = vmatpush3.msra.mxu0 %v31_v6  ;;  %253 = vmatpush3.msra.mxu1 %v31_v6 }
  0x10   :  { %201 = vmatprep.subr.mxu0 %v30_v7  ;;  %238 = vmatprep.subr.mxu1 %v30_v7 }
  0x11   :  { %202 = vmatpush3.msra.mxu0 %v30_v7  ;;  %254 = vmatpush3.msra.mxu1 %v30_v7 }
  0x12   :  { %203 = vmatprep.subr.mxu0 %v29_v8  ;;  %239 = vmatprep.subr.mxu1 %v29_v8 }
  0x13   :  { %204 = vmatpush3.msra.mxu0 %v29_v8  ;;  %255 = vmatpush3.msra.mxu1 %v29_v8 }
  0x14   :  { %205 = vmatprep.subr.mxu0 %v28_v9  ;;  %240 = vmatprep.subr.mxu1 %v28_v9 }
  0x15   :  { %206 = vmatpush3.msra.mxu0 %v28_v9  ;;  %256 = vmatpush3.msra.mxu1 %v28_v9 }
  0x16   :  { %207 = vmatprep.subr.mxu0 %v27_v10  ;;  %241 = vmatprep.subr.mxu1 %v27_v10 }
  0x17   :  { %208 = vmatpush3.msra.mxu0 %v27_v10  ;;  %257 = vmatpush3.msra.mxu1 %v27_v10 }
  0x18   :  { %209 = vmatprep.subr.mxu0 %v26_v11  ;;  %242 = vmatprep.subr.mxu1 %v26_v11 }
  0x19   :  { %210 = vmatpush3.msra.mxu0 %v26_v11  ;;  %258 = vmatpush3.msra.mxu1 %v26_v11 }
  0x1a   :  { %211 = vmatprep.subr.mxu0 %v25_v12  ;;  %243 = vmatprep.subr.mxu1 %v25_v12 }
  0x1b   :  { %212 = vmatpush3.msra.mxu0 %v25_v12  ;;  %259 = vmatpush3.msra.mxu1 %v25_v12 }
  0x1c   :  { %213 = vmatprep.subr.mxu0 %v24_v13  ;;  %244 = vmatprep.subr.mxu1 %v24_v13 }
  0x1d   :  { %214 = vmatpush3.msra.mxu0 %v24_v13  ;;  %260 = vmatpush3.msra.mxu1 %v24_v13 }
  0x1e   :  { %215 = vmatprep.subr.mxu0 %v23_v14  ;;  %245 = vmatprep.subr.mxu1 %v23_v14 }
  0x1f   :  { %216 = vmatpush3.msra.mxu0 %v23_v14  ;;  %261 = vmatpush3.msra.mxu1 %v23_v14 }
  0x20   :  { %217 = vmatprep.subr.mxu0 %v22_v15  ;;  %246 = vmatprep.subr.mxu1 %v22_v15 }
  0x21   :  { %218 = vmatpush3.msra.mxu0 %v22_v15  ;;  %262 = vmatpush3.msra.mxu1 %v22_v15 }
  0x22   :  { %219 = vmatprep.mubr.f32.mxu0 %v14_v16  ;;  %225 = vmatprep.mubr.f32.mxu1 %v18_v17 }
  0x23   :  { %220 = vmatmul.mubr.f32.vlgmr.msra.gmra.mxu0 %v15_v18  ;;  %226 = vmatmul.mubr.f32.vlgmr.msra.gmra.mxu1 %v19_v19 }
  0x24   :  { %222 = vmatprep.mubr.f32.mxu0 %v16_v20  ;;  %228 = vmatprep.mubr.f32.mxu1 %v20_v21 }
  0x27   :  { %223 = vmatmul.mubr.f32.gmra.mxu0 %v17_v22  ;;  %229 = vmatmul.mubr.f32.gmra.mxu1 %v21_v23 }
  0xe3   :  { %v221_v25 = vpop.f32.mrf.mxu0  ;;  %v227_v26 = vpop.f32.mrf.mxu1 }
  0xe4   :  { %v117_v27 = vadd.f32 %v221_v25, %v162_v24  ;;  %v137_v28 = vadd.f32 %v227_v26, %v162_v24 }
  0xe5   :  { %v111_v29 = vpop.f32.mrf.mxu0  ;;  %v131_v30 = vpop.f32.mrf.mxu1 }
  0xe6   :  { %151 = vst [vmem:[%s385_s3 + $0x8] sm:$0xff] %v117_v27  ;;  %155 = vst [vmem:[%s385_s3 + $0x28] sm:$0xff] %v137_v28  ;;  %v112_v31 = vadd.f32 %v162_v24, %v111_v29  ;;  %v132_v32 = vadd.f32 %v162_v24, %v131_v30 }
  0xe7   :  { %v224_v33 = vpop.f32.mrf.mxu0  ;;  %v230_v34 = vpop.f32.mrf.mxu1 }
  0xe8   :  { %150 = vst [vmem:[%s385_s3] sm:$0xff] %v112_v31  ;;  %154 = vst [vmem:[%s385_s3 + $0x20] sm:$0xff] %v132_v32  ;;  %v127_v35 = vadd.f32 %v224_v33, %v162_v24  ;;  %v147_v36 = vadd.f32 %v230_v34, %v162_v24 }
  0xe9   :  { %v121_v37 = vpop.f32.mrf.mxu0  ;;  %v141_v38 = vpop.f32.mrf.mxu1 }
  0xea   :  { %153 = vst [vmem:[%s385_s3 + $0x18] sm:$0xff] %v127_v35  ;;  %157 = vst [vmem:[%s385_s3 + $0x38] sm:$0xff] %v147_v36  ;;  %v122_v39 = vadd.f32 %v162_v24, %v121_v37  ;;  %v142_v40 = vadd.f32 %v162_v24, %v141_v38 }
  0xec   :  { %152 = vst [vmem:[%s385_s3 + $0x10] sm:$0xff] %v122_v39  ;;  %156 = vst [vmem:[%s385_s3 + $0x30] sm:$0xff] %v142_v40 }

// kernel: rnn_forward.6
= control target key start
LH: loop header
LB: loop body
LE: loop exit
PB: predicated region body
PF: predicated region fallthrough
CT: control target
= control target key end

     0   :  { %v1092_v0 = vmov 0.0   ;;  %vm1093_vm0 = vmmov 0   ;;  %s1510_s1 = inlined_call_operand.vmem [shape: f32[128,128], index: 1, kind: input, shape index: {}]   ;;  %s1511_s0 = inlined_call_operand.vmem [shape: f32[8,8,128], index: 0, kind: input, shape index: {}]   ;;  %s1512_s2 = inlined_call_operand.vmem [shape: f32[8,8,128], index: 2, kind: output, shape index: {}]  }
   0x1   :  { %794 = vmatprep.subr.mxu0 %v1092_v0  ;;  %v1113_v1 = vld [vmem:[%s1510_s1 + $0x78] sm:$0xff]  ;;  %v1118_v2 = vld [vmem:[%s1510_s1 + $0x70] sm:$0xff]  ;;  %826 = vmatprep.mubr.msk.f32.mxu0 %vm1093_vm0, %v1092_v0  ;;  %v1128_v3 = vld [vmem:[%s1510_s1 + $0x68] sm:$0xff] }
   0x2   :  { %795 = vmatpush3.msra.mxu0 %v1113_v1  ;;  %829 = vmatprep.subr.mxu1 %v1092_v0  ;;  %v1137_v4 = vld [vmem:[%s1510_s1 + $0x60] sm:$0xff]  ;;  %v1146_v5 = vld [vmem:[%s1510_s1 + $0x58] sm:$0xff]  ;;  %v1155_v6 = vld [vmem:[%s1510_s1 + $0x50] sm:$0xff] }
   0x3   :  { %796 = vmatprep.subr.mxu0 %v1092_v0  ;;  %830 = vmatpush3.msra.mxu1 %v1113_v1  ;;  %v1164_v7 = vld [vmem:[%s1510_s1 + $0x48] sm:$0xff]  ;;  %v1173_v8 = vld [vmem:[%s1510_s1 + $0x40] sm:$0xff]  ;;  %v1182_v9 = vld [vmem:[%s1510_s1 + $0x38] sm:$0xff] }
   0x4   :  { %797 = vmatpush3.msra.mxu0 %v1118_v2  ;;  %831 = vmatprep.subr.mxu1 %v1092_v0  ;;  %v1191_v10 = vld [vmem:[%s1510_s1 + $0x30] sm:$0xff]  ;;  %v1200_v11 = vld [vmem:[%s1510_s1 + $0x28] sm:$0xff]  ;;  %v1209_v12 = vld [vmem:[%s1510_s1 + $0x20] sm:$0xff] }
   0x5   :  { %798 = vmatprep.subr.mxu0 %v1092_v0  ;;  %832 = vmatpush3.msra.mxu1 %v1118_v2  ;;  %v1218_v13 = vld [vmem:[%s1510_s1 + $0x18] sm:$0xff]  ;;  %v1227_v14 = vld [vmem:[%s1510_s1 + $0x10] sm:$0xff]  ;;  %v1236_v15 = vld [vmem:[%s1510_s1 + $0x8] sm:$0xff] }
   0x6   :  { %799 = vmatpush3.msra.mxu0 %v1128_v3  ;;  %833 = vmatprep.subr.mxu1 %v1092_v0  ;;  %v1245_v16 = vld [vmem:[%s1510_s1] sm:$0xff]  ;;  %v644_v22 = vld [vmem:[%s1511_s0 + $0x8] sm:$0xff]  ;;  %v646_v27 = vld [vmem:[%s1511_s0 + $0x10] sm:$0xff] }
   0x7   :  { %800 = vmatprep.subr.mxu0 %v1092_v0  ;;  %834 = vmatpush3.msra.mxu1 %v1128_v3  ;;  %v33_v17 = vld [vmem:[%s1511_s0] sm:$0xff]  ;;  %v648_v32 = vld [vmem:[%s1511_s0 + $0x18] sm:$0xff]  ;;  %v652_v42 = vld [vmem:[%s1511_s0 + $0x28] sm:$0xff] }
   0x8   :  { %801 = vmatpush3.msra.mxu0 %v1137_v4  ;;  %835 = vmatprep.subr.mxu1 %v1092_v0  ;;  %v650_v37 = vld [vmem:[%s1511_s0 + $0x20] sm:$0xff]  ;;  %v654_v47 = vld [vmem:[%s1511_s0 + $0x30] sm:$0xff]  ;;  %v656_v52 = vld [vmem:[%s1511_s0 + $0x38] sm:$0xff] }
   0x9   :  { %802 = vmatprep.subr.mxu0 %v1092_v0  ;;  %836 = vmatpush3.msra.mxu1 %v1137_v4 }
   0xa   :  { %803 = vmatpush3.msra.mxu0 %v1146_v5  ;;  %837 = vmatprep.subr.mxu1 %v1092_v0 }
   0xb   :  { %804 = vmatprep.subr.mxu0 %v1092_v0  ;;  %838 = vmatpush3.msra.mxu1 %v1146_v5 }
   0xc   :  { %805 = vmatpush3.msra.mxu0 %v1155_v6  ;;  %839 = vmatprep.subr.mxu1 %v1092_v0 }
   0xd   :  { %806 = vmatprep.subr.mxu0 %v1092_v0  ;;  %840 = vmatpush3.msra.mxu1 %v1155_v6 }
   0xe   :  { %807 = vmatpush3.msra.mxu0 %v1164_v7  ;;  %841 = vmatprep.subr.mxu1 %v1092_v0 }
   0xf   :  { %808 = vmatprep.subr.mxu0 %v1092_v0  ;;  %842 = vmatpush3.msra.mxu1 %v1164_v7 }
  0x10   :  { %809 = vmatpush3.msra.mxu0 %v1173_v8  ;;  %843 = vmatprep.subr.mxu1 %v1092_v0 }
  0x11   :  { %810 = vmatprep.subr.mxu0 %v1092_v0  ;;  %844 = vmatpush3.msra.mxu1 %v1173_v8 }
  0x12   :  { %811 = vmatpush3.msra.mxu0 %v1182_v9  ;;  %845 = vmatprep.subr.mxu1 %v1092_v0 }
  0x13   :  { %812 = vmatprep.subr.mxu0 %v1092_v0  ;;  %846 = vmatpush3.msra.mxu1 %v1182_v9 }
  0x14   :  { %813 = vmatpush3.msra.mxu0 %v1191_v10  ;;  %847 = vmatprep.subr.mxu1 %v1092_v0 }
  0x15   :  { %814 = vmatprep.subr.mxu0 %v1092_v0  ;;  %848 = vmatpush3.msra.mxu1 %v1191_v10 }
  0x16   :  { %815 = vmatpush3.msra.mxu0 %v1200_v11  ;;  %849 = vmatprep.subr.mxu1 %v1092_v0 }
  0x17   :  { %816 = vmatprep.subr.mxu0 %v1092_v0  ;;  %850 = vmatpush3.msra.mxu1 %v1200_v11 }
  0x18   :  { %817 = vmatpush3.msra.mxu0 %v1209_v12  ;;  %851 = vmatprep.subr.mxu1 %v1092_v0 }
  0x19   :  { %818 = vmatprep.subr.mxu0 %v1092_v0  ;;  %852 = vmatpush3.msra.mxu1 %v1209_v12 }
  0x1a   :  { %819 = vmatpush3.msra.mxu0 %v1218_v13  ;;  %853 = vmatprep.subr.mxu1 %v1092_v0 }
  0x1b   :  { %820 = vmatprep.subr.mxu0 %v1092_v0  ;;  %854 = vmatpush3.msra.mxu1 %v1218_v13 }
  0x1c   :  { %821 = vmatpush3.msra.mxu0 %v1227_v14  ;;  %855 = vmatprep.subr.mxu1 %v1092_v0 }
  0x1d   :  { %822 = vmatprep.subr.mxu0 %v1092_v0  ;;  %856 = vmatpush3.msra.mxu1 %v1227_v14 }
  0x1e   :  { %823 = vmatpush3.msra.mxu0 %v1236_v15  ;;  %857 = vmatprep.subr.mxu1 %v1092_v0 }
  0x1f   :  { %824 = vmatprep.subr.mxu0 %v1092_v0  ;;  %858 = vmatpush3.msra.mxu1 %v1236_v15 }
  0x20   :  { %825 = vmatpush3.msra.mxu0 %v1245_v16  ;;  %859 = vmatprep.subr.mxu1 %v1092_v0 }
  0x21   :  { %827 = vmatmul.mubr.f32.vlgmr.msra.gmra.mxu0 %v1092_v0  ;;  %860 = vmatpush3.msra.mxu1 %v1245_v16 }
  0x22   :  { %861 = vmatprep.mubr.msk.f32.mxu1 %vm1093_vm0, %v1092_v0  ;;  %864 = vmatprep.subr.mxu0 %v1092_v0 }
  0x23   :  { %865 = vmatpush3.msra.mxu0 %v1113_v1  ;;  %896 = vmatprep.mubr.msk.f32.mxu0 %vm1093_vm0, %v1092_v0 }
  0x24   :  { %866 = vmatprep.subr.mxu0 %v1092_v0  ;;  %899 = vmatprep.subr.mxu1 %v1092_v0 }
  0x25   :  { %867 = vmatpush3.msra.mxu0 %v1118_v2 }
  0x26   :  { %868 = vmatprep.subr.mxu0 %v1092_v0 }
  0x27   :  { %869 = vmatpush3.msra.mxu0 %v1128_v3 }
  0x28   :  { %870 = vmatprep.subr.mxu0 %v1092_v0 }
  0x29   :  { %871 = vmatpush3.msra.mxu0 %v1137_v4 }
  0x2a   :  { %872 = vmatprep.subr.mxu0 %v1092_v0 }
  0x2b   :  { %873 = vmatpush3.msra.mxu0 %v1146_v5 }
  0x2c   :  { %874 = vmatprep.subr.mxu0 %v1092_v0 }
  0x2d   :  { %875 = vmatpush3.msra.mxu0 %v1155_v6 }
  0x2e   :  { %876 = vmatprep.subr.mxu0 %v1092_v0 }
  0x2f   :  { %877 = vmatpush3.msra.mxu0 %v1164_v7 }
  0x30   :  { %878 = vmatprep.subr.mxu0 %v1092_v0 }
  0x31   :  { %879 = vmatpush3.msra.mxu0 %v1173_v8 }
  0x32   :  { %880 = vmatprep.subr.mxu0 %v1092_v0 }
  0x33   :  { %881 = vmatpush3.msra.mxu0 %v1182_v9 }
  0x34   :  { %882 = vmatprep.subr.mxu0 %v1092_v0 }
  0x35   :  { %883 = vmatpush3.msra.mxu0 %v1191_v10 }
  0x36   :  { %884 = vmatprep.subr.mxu0 %v1092_v0 }
  0x37   :  { %885 = vmatpush3.msra.mxu0 %v1200_v11 }
  0x38   :  { %886 = vmatprep.subr.mxu0 %v1092_v0 }
  0x39   :  { %887 = vmatpush3.msra.mxu0 %v1209_v12 }
  0x3a   :  { %888 = vmatprep.subr.mxu0 %v1092_v0 }
  0x3b   :  { %889 = vmatpush3.msra.mxu0 %v1218_v13 }
  0x3c   :  { %890 = vmatprep.subr.mxu0 %v1092_v0 }
  0x3d   :  { %891 = vmatpush3.msra.mxu0 %v1227_v14 }
  0x3e   :  { %892 = vmatprep.subr.mxu0 %v1092_v0 }
  0x3f   :  { %893 = vmatpush3.msra.mxu0 %v1236_v15 }
  0x40   :  { %894 = vmatprep.subr.mxu0 %v1092_v0 }
  0x41   :  { %895 = vmatpush3.msra.mxu0 %v1245_v16 }
  0x42   :  { %934 = vmatprep.subr.mxu0 %v1092_v0 }
  0xe1   :  { %v100_v18 = vpop.f32.mrf.mxu0 }
  0xe2   :  { %v104_v19 = vadd.f32 %v100_v18, %v33_v17 }
  0xe3   :  { %v828_v20 = vpop.f32.mrf.mxu0 }
  0xe4   :  { %1076 = vtanh.f32 %v104_v19 }
  0xf1   :  { %v1077_v21 = vpop.eup %1076 }
  0xf2   :  { %106 = vst [vmem:[%s1512_s2] sm:$0xff] %v1077_v21  ;;  %862 = vmatmul.mubr.f32.vlgmr.msra.gmra.mxu1 %v1077_v21 }
  0xf3   :  { %900 = vmatpush3.msra.mxu1 %v1113_v1  ;;  %931 = vmatprep.mubr.msk.f32.mxu1 %vm1093_vm0, %v1092_v0 }
  0xf4   :  { %901 = vmatprep.subr.mxu1 %v1092_v0 }
  0xf5   :  { %902 = vmatpush3.msra.mxu1 %v1118_v2 }
  0xf6   :  { %903 = vmatprep.subr.mxu1 %v1092_v0 }
  0xf7   :  { %904 = vmatpush3.msra.mxu1 %v1128_v3 }
  0xf8   :  { %905 = vmatprep.subr.mxu1 %v1092_v0 }
  0xf9   :  { %906 = vmatpush3.msra.mxu1 %v1137_v4 }
  0xfa   :  { %907 = vmatprep.subr.mxu1 %v1092_v0 }
  0xfb   :  { %908 = vmatpush3.msra.mxu1 %v1146_v5 }
  0xfc   :  { %909 = vmatprep.subr.mxu1 %v1092_v0 }
  0xfd   :  { %910 = vmatpush3.msra.mxu1 %v1155_v6 }
  0xfe   :  { %911 = vmatprep.subr.mxu1 %v1092_v0 }
  0xff   :  { %912 = vmatpush3.msra.mxu1 %v1164_v7 }
 0x100   :  { %913 = vmatprep.subr.mxu1 %v1092_v0 }
 0x101   :  { %914 = vmatpush3.msra.mxu1 %v1173_v8 }
 0x102   :  { %915 = vmatprep.subr.mxu1 %v1092_v0 }
 0x103   :  { %916 = vmatpush3.msra.mxu1 %v1182_v9 }
 0x104   :  { %917 = vmatprep.subr.mxu1 %v1092_v0 }
 0x105   :  { %918 = vmatpush3.msra.mxu1 %v1191_v10 }
 0x106   :  { %919 = vmatprep.subr.mxu1 %v1092_v0 }
 0x107   :  { %920 = vmatpush3.msra.mxu1 %v1200_v11 }
 0x108   :  { %921 = vmatprep.subr.mxu1 %v1092_v0 }
 0x109   :  { %922 = vmatpush3.msra.mxu1 %v1209_v12 }
 0x10a   :  { %923 = vmatprep.subr.mxu1 %v1092_v0 }
 0x10b   :  { %924 = vmatpush3.msra.mxu1 %v1218_v13 }
 0x10c   :  { %925 = vmatprep.subr.mxu1 %v1092_v0 }
 0x10d   :  { %926 = vmatpush3.msra.mxu1 %v1227_v14 }
 0x10e   :  { %927 = vmatprep.subr.mxu1 %v1092_v0 }
 0x10f   :  { %928 = vmatpush3.msra.mxu1 %v1236_v15 }
 0x110   :  { %929 = vmatprep.subr.mxu1 %v1092_v0 }
 0x111   :  { %930 = vmatpush3.msra.mxu1 %v1245_v16 }
 0x112   :  { %969 = vmatprep.subr.mxu1 %v1092_v0 }
 0x1b2   :  { %v175_v23 = vpop.f32.mrf.mxu1 }
 0x1b3   :  { %v179_v24 = vadd.f32 %v644_v22, %v175_v23 }
 0x1b4   :  { %v863_v25 = vpop.f32.mrf.mxu1 }
 0x1b5   :  { %1078 = vtanh.f32 %v179_v24 }
 0x1c2   :  { %v1079_v26 = vpop.eup %1078 }
 0x1c3   :  { %645 = vst [vmem:[%s1512_s2 + $0x8] sm:$0xff] %v1079_v26  ;;  %897 = vmatmul.mubr.f32.vlgmr.msra.gmra.mxu0 %v1079_v26 }
 0x1c4   :  { %935 = vmatpush3.msra.mxu0 %v1113_v1  ;;  %966 = vmatprep.mubr.msk.f32.mxu0 %vm1093_vm0, %v1092_v0 }
 0x1c5   :  { %936 = vmatprep.subr.mxu0 %v1092_v0 }
 0x1c6   :  { %937 = vmatpush3.msra.mxu0 %v1118_v2 }
 0x1c7   :  { %938 = vmatprep.subr.mxu0 %v1092_v0 }
 0x1c8   :  { %939 = vmatpush3.msra.mxu0 %v1128_v3 }
 0x1c9   :  { %940 = vmatprep.subr.mxu0 %v1092_v0 }
 0x1ca   :  { %941 = vmatpush3.msra.mxu0 %v1137_v4 }
 0x1cb   :  { %942 = vmatprep.subr.mxu0 %v1092_v0 }
 0x1cc   :  { %943 = vmatpush3.msra.mxu0 %v1146_v5 }
 0x1cd   :  { %944 = vmatprep.subr.mxu0 %v1092_v0 }
 0x1ce   :  { %945 = vmatpush3.msra.mxu0 %v1155_v6 }
 0x1cf   :  { %946 = vmatprep.subr.mxu0 %v1092_v0 }
 0x1d0   :  { %947 = vmatpush3.msra.mxu0 %v1164_v7 }
 0x1d1   :  { %948 = vmatprep.subr.mxu0 %v1092_v0 }
 0x1d2   :  { %949 = vmatpush3.msra.mxu0 %v1173_v8 }
 0x1d3   :  { %950 = vmatprep.subr.mxu0 %v1092_v0 }
 0x1d4   :  { %951 = vmatpush3.msra.mxu0 %v1182_v9 }
 0x1d5   :  { %952 = vmatprep.subr.mxu0 %v1092_v0 }
 0x1d6   :  { %953 = vmatpush3.msra.mxu0 %v1191_v10 }
 0x1d7   :  { %954 = vmatprep.subr.mxu0 %v1092_v0 }
 0x1d8   :  { %955 = vmatpush3.msra.mxu0 %v1200_v11 }
 0x1d9   :  { %956 = vmatprep.subr.mxu0 %v1092_v0 }
 0x1da   :  { %957 = vmatpush3.msra.mxu0 %v1209_v12 }
 0x1db   :  { %958 = vmatprep.subr.mxu0 %v1092_v0 }
 0x1dc   :  { %959 = vmatpush3.msra.mxu0 %v1218_v13 }
 0x1dd   :  { %960 = vmatprep.subr.mxu0 %v1092_v0 }
 0x1de   :  { %961 = vmatpush3.msra.mxu0 %v1227_v14 }
 0x1df   :  { %962 = vmatprep.subr.mxu0 %v1092_v0 }
 0x1e0   :  { %963 = vmatpush3.msra.mxu0 %v1236_v15 }
 0x1e1   :  { %964 = vmatprep.subr.mxu0 %v1092_v0 }
 0x1e2   :  { %965 = vmatpush3.msra.mxu0 %v1245_v16 }
 0x1e3   :  { %1004 = vmatprep.subr.mxu0 %v1092_v0 }
 0x283   :  { %v251_v28 = vpop.f32.mrf.mxu0 }
 0x284   :  { %v255_v29 = vadd.f32 %v646_v27, %v251_v28 }
 0x285   :  { %v898_v30 = vpop.f32.mrf.mxu0 }
 0x286   :  { %1080 = vtanh.f32 %v255_v29 }
 0x293   :  { %v1081_v31 = vpop.eup %1080 }
 0x294   :  { %647 = vst [vmem:[%s1512_s2 + $0x10] sm:$0xff] %v1081_v31  ;;  %932 = vmatmul.mubr.f32.vlgmr.msra.gmra.mxu1 %v1081_v31 }
 0x295   :  { %970 = vmatpush3.msra.mxu1 %v1113_v1  ;;  %1001 = vmatprep.mubr.msk.f32.mxu1 %vm1093_vm0, %v1092_v0 }
 0x296   :  { %971 = vmatprep.subr.mxu1 %v1092_v0 }
 0x297   :  { %972 = vmatpush3.msra.mxu1 %v1118_v2 }
 0x298   :  { %973 = vmatprep.subr.mxu1 %v1092_v0 }
 0x299   :  { %974 = vmatpush3.msra.mxu1 %v1128_v3 }
 0x29a   :  { %975 = vmatprep.subr.mxu1 %v1092_v0 }
 0x29b   :  { %976 = vmatpush3.msra.mxu1 %v1137_v4 }
 0x29c   :  { %977 = vmatprep.subr.mxu1 %v1092_v0 }
 0x29d   :  { %978 = vmatpush3.msra.mxu1 %v1146_v5 }
 0x29e   :  { %979 = vmatprep.subr.mxu1 %v1092_v0 }
 0x29f   :  { %980 = vmatpush3.msra.mxu1 %v1155_v6 }
 0x2a0   :  { %981 = vmatprep.subr.mxu1 %v1092_v0 }
 0x2a1   :  { %982 = vmatpush3.msra.mxu1 %v1164_v7 }
 0x2a2   :  { %983 = vmatprep.subr.mxu1 %v1092_v0 }
 0x2a3   :  { %984 = vmatpush3.msra.mxu1 %v1173_v8 }
 0x2a4   :  { %985 = vmatprep.subr.mxu1 %v1092_v0 }
 0x2a5   :  { %986 = vmatpush3.msra.mxu1 %v1182_v9 }
 0x2a6   :  { %987 = vmatprep.subr.mxu1 %v1092_v0 }
 0x2a7   :  { %988 = vmatpush3.msra.mxu1 %v1191_v10 }
 0x2a8   :  { %989 = vmatprep.subr.mxu1 %v1092_v0 }
 0x2a9   :  { %990 = vmatpush3.msra.mxu1 %v1200_v11 }
 0x2aa   :  { %991 = vmatprep.subr.mxu1 %v1092_v0 }
 0x2ab   :  { %992 = vmatpush3.msra.mxu1 %v1209_v12 }
 0x2ac   :  { %993 = vmatprep.subr.mxu1 %v1092_v0 }
 0x2ad   :  { %994 = vmatpush3.msra.mxu1 %v1218_v13 }
 0x2ae   :  { %995 = vmatprep.subr.mxu1 %v1092_v0 }
 0x2af   :  { %996 = vmatpush3.msra.mxu1 %v1227_v14 }
 0x2b0   :  { %997 = vmatprep.subr.mxu1 %v1092_v0 }
 0x2b1   :  { %998 = vmatpush3.msra.mxu1 %v1236_v15 }
 0x2b2   :  { %999 = vmatprep.subr.mxu1 %v1092_v0 }
 0x2b3   :  { %1000 = vmatpush3.msra.mxu1 %v1245_v16 }
 0x2b4   :  { %1039 = vmatprep.subr.mxu1 %v1092_v0 }
 0x354   :  { %v327_v33 = vpop.f32.mrf.mxu1 }
 0x355   :  { %v331_v34 = vadd.f32 %v648_v32, %v327_v33 }
 0x356   :  { %v933_v35 = vpop.f32.mrf.mxu1 }
 0x357   :  { %1082 = vtanh.f32 %v331_v34 }
 0x364   :  { %v1083_v36 = vpop.eup %1082 }
 0x365   :  { %649 = vst [vmem:[%s1512_s2 + $0x18] sm:$0xff] %v1083_v36  ;;  %967 = vmatmul.mubr.f32.vlgmr.msra.gmra.mxu0 %v1083_v36 }
 0x366   :  { %1005 = vmatpush3.msra.mxu0 %v1113_v1  ;;  %1036 = vmatprep.mubr.msk.f32.mxu0 %vm1093_vm0, %v1092_v0 }
 0x367   :  { %1006 = vmatprep.subr.mxu0 %v1092_v0 }
 0x368   :  { %1007 = vmatpush3.msra.mxu0 %v1118_v2 }
 0x369   :  { %1008 = vmatprep.subr.mxu0 %v1092_v0 }
 0x36a   :  { %1009 = vmatpush3.msra.mxu0 %v1128_v3 }
 0x36b   :  { %1010 = vmatprep.subr.mxu0 %v1092_v0 }
 0x36c   :  { %1011 = vmatpush3.msra.mxu0 %v1137_v4 }
 0x36d   :  { %1012 = vmatprep.subr.mxu0 %v1092_v0 }
 0x36e   :  { %1013 = vmatpush3.msra.mxu0 %v1146_v5 }
 0x36f   :  { %1014 = vmatprep.subr.mxu0 %v1092_v0 }
 0x370   :  { %1015 = vmatpush3.msra.mxu0 %v1155_v6 }
 0x371   :  { %1016 = vmatprep.subr.mxu0 %v1092_v0 }
 0x372   :  { %1017 = vmatpush3.msra.mxu0 %v1164_v7 }
 0x373   :  { %1018 = vmatprep.subr.mxu0 %v1092_v0 }
 0x374   :  { %1019 = vmatpush3.msra.mxu0 %v1173_v8 }
 0x375   :  { %1020 = vmatprep.subr.mxu0 %v1092_v0 }
 0x376   :  { %1021 = vmatpush3.msra.mxu0 %v1182_v9 }
 0x377   :  { %1022 = vmatprep.subr.mxu0 %v1092_v0 }
 0x378   :  { %1023 = vmatpush3.msra.mxu0 %v1191_v10 }
 0x379   :  { %1024 = vmatprep.subr.mxu0 %v1092_v0 }
 0x37a   :  { %1025 = vmatpush3.msra.mxu0 %v1200_v11 }
 0x37b   :  { %1026 = vmatprep.subr.mxu0 %v1092_v0 }
 0x37c   :  { %1027 = vmatpush3.msra.mxu0 %v1209_v12 }
 0x37d   :  { %1028 = vmatprep.subr.mxu0 %v1092_v0 }
 0x37e   :  { %1029 = vmatpush3.msra.mxu0 %v1218_v13 }
 0x37f   :  { %1030 = vmatprep.subr.mxu0 %v1092_v0 }
 0x380   :  { %1031 = vmatpush3.msra.mxu0 %v1227_v14 }
 0x381   :  { %1032 = vmatprep.subr.mxu0 %v1092_v0 }
 0x382   :  { %1033 = vmatpush3.msra.mxu0 %v1236_v15 }
 0x383   :  { %1034 = vmatprep.subr.mxu0 %v1092_v0 }
 0x384   :  { %1035 = vmatpush3.msra.mxu0 %v1245_v16 }
 0x425   :  { %v403_v38 = vpop.f32.mrf.mxu0 }
 0x426   :  { %v407_v39 = vadd.f32 %v650_v37, %v403_v38 }
 0x427   :  { %v968_v40 = vpop.f32.mrf.mxu0 }
 0x428   :  { %1084 = vtanh.f32 %v407_v39 }
 0x435   :  { %v1085_v41 = vpop.eup %1084 }
 0x436   :  { %651 = vst [vmem:[%s1512_s2 + $0x20] sm:$0xff] %v1085_v41  ;;  %1002 = vmatmul.mubr.f32.vlgmr.msra.gmra.mxu1 %v1085_v41 }
 0x437   :  { %1040 = vmatpush3.msra.mxu1 %v1113_v1  ;;  %1071 = vmatprep.mubr.msk.f32.mxu1 %vm1093_vm0, %v1092_v0 }
 0x438   :  { %1041 = vmatprep.subr.mxu1 %v1092_v0 }
 0x439   :  { %1042 = vmatpush3.msra.mxu1 %v1118_v2 }
 0x43a   :  { %1043 = vmatprep.subr.mxu1 %v1092_v0 }
 0x43b   :  { %1044 = vmatpush3.msra.mxu1 %v1128_v3 }
 0x43c   :  { %1045 = vmatprep.subr.mxu1 %v1092_v0 }
 0x43d   :  { %1046 = vmatpush3.msra.mxu1 %v1137_v4 }
 0x43e   :  { %1047 = vmatprep.subr.mxu1 %v1092_v0 }
 0x43f   :  { %1048 = vmatpush3.msra.mxu1 %v1146_v5 }
 0x440   :  { %1049 = vmatprep.subr.mxu1 %v1092_v0 }
 0x441   :  { %1050 = vmatpush3.msra.mxu1 %v1155_v6 }
 0x442   :  { %1051 = vmatprep.subr.mxu1 %v1092_v0 }
 0x443   :  { %1052 = vmatpush3.msra.mxu1 %v1164_v7 }
 0x444   :  { %1053 = vmatprep.subr.mxu1 %v1092_v0 }
 0x445   :  { %1054 = vmatpush3.msra.mxu1 %v1173_v8 }
 0x446   :  { %1055 = vmatprep.subr.mxu1 %v1092_v0 }
 0x447   :  { %1056 = vmatpush3.msra.mxu1 %v1182_v9 }
 0x448   :  { %1057 = vmatprep.subr.mxu1 %v1092_v0 }
 0x449   :  { %1058 = vmatpush3.msra.mxu1 %v1191_v10 }
 0x44a   :  { %1059 = vmatprep.subr.mxu1 %v1092_v0 }
 0x44b   :  { %1060 = vmatpush3.msra.mxu1 %v1200_v11 }
 0x44c   :  { %1061 = vmatprep.subr.mxu1 %v1092_v0 }
 0x44d   :  { %1062 = vmatpush3.msra.mxu1 %v1209_v12 }
 0x44e   :  { %1063 = vmatprep.subr.mxu1 %v1092_v0 }
 0x44f   :  { %1064 = vmatpush3.msra.mxu1 %v1218_v13 }
 0x450   :  { %1065 = vmatprep.subr.mxu1 %v1092_v0 }
 0x451   :  { %1066 = vmatpush3.msra.mxu1 %v1227_v14 }
 0x452   :  { %1067 = vmatprep.subr.mxu1 %v1092_v0 }
 0x453   :  { %1068 = vmatpush3.msra.mxu1 %v1236_v15 }
 0x454   :  { %1069 = vmatprep.subr.mxu1 %v1092_v0 }
 0x455   :  { %1070 = vmatpush3.msra.mxu1 %v1245_v16 }
 0x4f6   :  { %v479_v43 = vpop.f32.mrf.mxu1 }
 0x4f7   :  { %v483_v44 = vadd.f32 %v652_v42, %v479_v43 }
 0x4f8   :  { %v1003_v45 = vpop.f32.mrf.mxu1 }
 0x4f9   :  { %1086 = vtanh.f32 %v483_v44 }
 0x506   :  { %v1087_v46 = vpop.eup %1086 }
 0x507   :  { %653 = vst [vmem:[%s1512_s2 + $0x28] sm:$0xff] %v1087_v46  ;;  %1037 = vmatmul.mubr.f32.vlgmr.msra.gmra.mxu0 %v1087_v46 }
 0x5c7   :  { %v555_v48 = vpop.f32.mrf.mxu0 }
 0x5c8   :  { %v559_v49 = vadd.f32 %v654_v47, %v555_v48 }
 0x5c9   :  { %v1038_v50 = vpop.f32.mrf.mxu0 }
 0x5ca   :  { %1088 = vtanh.f32 %v559_v49 }
 0x5d7   :  { %v1089_v51 = vpop.eup %1088 }
 0x5d8   :  { %655 = vst [vmem:[%s1512_s2 + $0x30] sm:$0xff] %v1089_v51  ;;  %1072 = vmatmul.mubr.f32.vlgmr.msra.gmra.mxu1 %v1089_v51 }
 0x698   :  { %v631_v53 = vpop.f32.mrf.mxu1 }
 0x699   :  { %v635_v54 = vadd.f32 %v656_v52, %v631_v53 }
 0x69a   :  { %v1073_v55 = vpop.f32.mrf.mxu1 }
 0x69b   :  { %1090 = vtanh.f32 %v635_v54 }
 0x6a8   :  { %v1091_v56 = vpop.eup %1090 }
 0x6a9   :  { %657 = vst [vmem:[%s1512_s2 + $0x38] sm:$0xff] %v1091_v56 }

</bundles_post_ra>
